<compile_context>
chip_gen: v5e
topology: v5e:2x2
jax: 0.10.0
libtpu: 0.0.40
codegen_flags: <defaults>
</compile_context>

<pallas_src>
import jax
import jax.numpy as jnp
from jax.experimental import pallas as pl
from jax.experimental.pallas import tpu as pltpu

LATENT = 512
HID1, HID2, NCLS = 256, 64, 5
OUT_PAD = 128            # lane-dense output width; sliced to NCLS in the wrapper
LRELU_HEAD = 0.1         # nn.LeakyReLU(0.1) in fc_o
LRELU_ENC = 0.2          # LeakyReLU(0.2) tail of the StyleEncoder shared stack


def _leaky_relu(x, slope):
    return jnp.where(x >= 0, x, slope * x)


# ---------------------------------------------------------------------------
# Fused kernel: mel (tB, M, tT) tiles -> running pooled sum -> encoder proj -> fc_o
# ---------------------------------------------------------------------------
def _make_fused_kernel(inv_t):
    def kernel(mel_ref, we_ref, be_ref, w1_ref, b1_ref, w2_ref, b2_ref,
               w3_ref, b3_ref, o_ref, sum_sc):
        t = pl.program_id(1)

        @pl.when(t == 0)
        def _():
            sum_sc[...] = jnp.zeros_like(sum_sc)

        # Pool: accumulate frame sum in f32.  Reduce over the last (lane) axis -> XLU.
        x = mel_ref[...].astype(jnp.float32)              # (tB, M, tT)
        sum_sc[...] += jnp.sum(x, axis=-1)                # (tB, M)

        @pl.when(t == pl.num_programs(1) - 1)
        def _():
            pooled = sum_sc[...] * inv_t                  # mean over all T frames (f32)

            # Encoder stand-in projection + LeakyReLU(0.2). bf16 operands, f32 acc.
            feat = jnp.dot(pooled.astype(jnp.bfloat16), we_ref[...],
                           preferred_element_type=jnp.float32) + be_ref[...]
            lat = _leaky_relu(feat, LRELU_ENC)            # (tB, 512) "latent"

            # fc_o head (Dropout == identity in eval mode).
            h1 = jnp.dot(lat.astype(jnp.bfloat16), w1_ref[...],
                         preferred_element_type=jnp.float32) + b1_ref[...]
            h1 = _leaky_relu(h1, LRELU_HEAD)
            h2 = jnp.dot(h1.astype(jnp.bfloat16), w2_ref[...],
                         preferred_element_type=jnp.float32) + b2_ref[...]
            h2 = _leaky_relu(h2, LRELU_HEAD)
            out = jnp.dot(h2.astype(jnp.bfloat16), w3_ref[...],
                          preferred_element_type=jnp.float32) + b3_ref[...]
            o_ref[...] = out.astype(o_ref.dtype)          # lane-dense (tB, 128) store

    return kernel


def _choose_t_tile(T):
    for tt in (512, 256, 128):
        if T % tt == 0:
            return tt
    return T  # full-extent block fallback (always legal)


def _choose_batch_tile(B):
    for tb in (128, 64, 32, 16, 8):
        if B % tb == 0:
            return tb
    return B  # full-extent block fallback


def _vmem_limit(tB, M, tT, n_weight_bytes):
    # 2x double-buffered bf16 mel tile + weights (conservatively x2) + scratch/out.
    mel_bytes = tB * M * tT * 2
    need = 2 * mel_bytes + 2 * n_weight_bytes + tB * M * 4 + tB * OUT_PAD * 4
    if need < (12 << 20):
        return None                      # comfortably below every generation's default
    return min(60 << 20, int(need * 1.25) + (2 << 20))


# ---------------------------------------------------------------------------
# Wrapper
# ---------------------------------------------------------------------------
def classifier_forward(params, F0, intensity, phoneme, mel):
    # F0 / intensity / phoneme are accepted but unused, matching the PyTorch forward.
    del F0, intensity, phoneme

    B, C, M, T = mel.shape
    assert C == 1, "StyleEncoder expects a single-channel mel spectrogram"
    # Channel squeeze only (free); NO full-tensor transpose. Layout: (B, M, T).
    mel_bmt = mel[:, 0, :, :].astype(jnp.bfloat16)

    tT = _choose_t_tile(T)
    tB = _choose_batch_tile(B)
    n_t = T // tT
    n_b = B // tB

    we, be = params["enc_w"], params["enc_b"]
    w1, b1 = params["w1"], params["b1"]
    w2, b2 = params["w2"], params["b2"]
    w3, b3 = params["w3"], params["b3"]        # already padded to OUT_PAD columns

    weight_bytes = sum(int(a.size) * a.dtype.itemsize
                       for a in (we, be, w1, b1, w2, b2, w3, b3))

    kernel = _make_fused_kernel(1.0 / float(T))

    out_padded = pl.pallas_call(
        kernel,
        out_shape=jax.ShapeDtypeStruct((B, OUT_PAD), jnp.float32),
        grid=(n_b, n_t),
        in_specs=[
            pl.BlockSpec((tB, M, tT), lambda b, t: (b, 0, t)),     # mel tile
            pl.BlockSpec((M, LATENT), lambda b, t: (0, 0)),        # enc_w
            pl.BlockSpec((1, LATENT), lambda b, t: (0, 0)),        # enc_b
            pl.BlockSpec((LATENT, HID1), lambda b, t: (0, 0)),     # w1
            pl.BlockSpec((1, HID1), lambda b, t: (0, 0)),          # b1
            pl.BlockSpec((HID1, HID2), lambda b, t: (0, 0)),       # w2
            pl.BlockSpec((1, HID2), lambda b, t: (0, 0)),          # b2
            pl.BlockSpec((HID2, OUT_PAD), lambda b, t: (0, 0)),    # w3 (padded)
            pl.BlockSpec((1, OUT_PAD), lambda b, t: (0, 0)),       # b3 (padded)
        ],
        out_specs=pl.BlockSpec((tB, OUT_PAD), lambda b, t: (b, 0)),
        scratch_shapes=[pltpu.VMEM((tB, M), jnp.float32)],
        compiler_params=pltpu.CompilerParams(
            dimension_semantics=("parallel", "arbitrary"),
            vmem_limit_bytes=_vmem_limit(tB, M, tT, weight_bytes),
        ),
    )(mel_bmt, we, be, w1, b1, w2, b2, w3, b3)

    output_o = out_padded[:, :NCLS]
    return output_o, None, None


# ---------------------------------------------------------------------------
# Parameters (PyTorch-Linear-style init); weights bf16, biases f32, w3/b3 padded.
# ---------------------------------------------------------------------------
def init_params(key, n_mels):
    ks = jax.random.split(key, 4)

    def lin(k, fan_in, fan_out):
        scale = 1.0 / jnp.sqrt(jnp.float32(fan_in))
        kw, kb = jax.random.split(k)
        w = jax.random.uniform(kw, (fan_in, fan_out), jnp.float32, -scale, scale)
        b = jax.random.uniform(kb, (1, fan_out), jnp.float32, -scale, scale)
        return w, b

    enc_w, enc_b = lin(ks[0], n_mels, LATENT)
    w1, b1 = lin(ks[1], LATENT, HID1)
    w2, b2 = lin(ks[2], HID1, HID2)
    w3, b3 = lin(ks[3], HID2, NCLS)

    # Pad the final layer to a lane-dense 128-wide output (zeros beyond NCLS).
    w3p = jnp.zeros((HID2, OUT_PAD), jnp.float32).at[:, :NCLS].set(w3)
    b3p = jnp.zeros((1, OUT_PAD), jnp.float32).at[:, :NCLS].set(b3)

    return dict(
        enc_w=enc_w.astype(jnp.bfloat16), enc_b=enc_b,
        w1=w1.astype(jnp.bfloat16), b1=b1,
        w2=w2.astype(jnp.bfloat16), b2=b2,
        w3=w3p.astype(jnp.bfloat16), b3=b3p,
    )


# Pure-JAX reference mirroring the kernel's bf16 casts (for a numeric sanity check).
def _reference_forward(params, mel):
    x = mel[:, 0, :, :].astype(jnp.bfloat16).astype(jnp.float32)   # (B, M, T)
    pooled = jnp.mean(x, axis=-1)                                  # (B, M)
    feat = jnp.dot(pooled.astype(jnp.bfloat16).astype(jnp.float32),
                   params["enc_w"].astype(jnp.float32)) + params["enc_b"]
    lat = _leaky_relu(feat, LRELU_ENC)
    h1 = jnp.dot(lat.astype(jnp.bfloat16).astype(jnp.float32),
                 params["w1"].astype(jnp.float32)) + params["b1"]
    h1 = _leaky_relu(h1, LRELU_HEAD)
    h2 = jnp.dot(h1.astype(jnp.bfloat16).astype(jnp.float32),
                 params["w2"].astype(jnp.float32)) + params["b2"]
    h2 = _leaky_relu(h2, LRELU_HEAD)
    out = jnp.dot(h2.astype(jnp.bfloat16).astype(jnp.float32),
                  params["w3"].astype(jnp.float32)) + params["b3"]
    return out[:, :NCLS]


if __name__ == "__main__":
    key = jax.random.PRNGKey(0)
    B, M, T = 2, 64, 384   # batch, mel bins, mel frames (T=384 -> 3 pooling tiles)

    kp, kf, ki, kph, km = jax.random.split(key, 5)
    params = init_params(kp, M)

    F0 = jax.random.normal(kf, (B, T), jnp.float32)
    intensity = jax.random.normal(ki, (B, T), jnp.float32)
    phoneme = jax.random.randint(kph, (B, T), 0, 40).astype(jnp.int32)
    mel = jax.random.normal(km, (B, 1, M, T), jnp.float32)   # NCHW, like PyTorch

    output_o, aux1, aux2 = classifier_forward(params, F0, intensity, phoneme, mel)
    output_o = jax.block_until_ready(output_o)

    assert output_o.shape == (B, NCLS), output_o.shape
    assert aux1 is None and aux2 is None
    assert bool(jnp.all(jnp.isfinite(output_o)))

    ref = _reference_forward(params, mel)
    assert bool(jnp.allclose(output_o, ref, rtol=2e-2, atol=2e-2)), (
        "mismatch vs reference:\n%s\n%s" % (output_o, ref))

    print("KERNEL_OK")
</pallas_src>

<mosaic_0001>
module attributes {stable_mosaic.version = 11 : i64} {
  func.func @kernel(%arg0: i32, %arg1: i32, %arg2: memref<2x64x128xbf16, #tpu.memory_space<vmem>>, %arg3: memref<64x512xbf16, #tpu.memory_space<vmem>>, %arg4: memref<1x512xf32, #tpu.memory_space<vmem>>, %arg5: memref<512x256xbf16, #tpu.memory_space<vmem>>, %arg6: memref<1x256xf32, #tpu.memory_space<vmem>>, %arg7: memref<256x64xbf16, #tpu.memory_space<vmem>>, %arg8: memref<1x64xf32, #tpu.memory_space<vmem>>, %arg9: memref<64x128xbf16, #tpu.memory_space<vmem>>, %arg10: memref<1x128xf32, #tpu.memory_space<vmem>>, %arg11: memref<2x128xf32, #tpu.memory_space<vmem>>, %arg12: memref<2x64xf32, #tpu.memory_space<vmem>>) attributes {dimension_semantics = [#tpu.dimension_semantics<parallel>, #tpu.dimension_semantics<arbitrary>], iteration_bounds = array<i64: 1, 3>, scalar_prefetch = 0 : i64, scratch_operands = 1 : i64, tpu.core_type = #tpu.core_type<tc>, window_params = [{transform_indices = @transform_0, window_bounds = array<i64: 2, 64, 128>}, {pipeline_mode = #tpu.pipeline_mode<synchronous>, transform_indices = @transform_1, window_bounds = array<i64: 64, 512>}, {pipeline_mode = #tpu.pipeline_mode<synchronous>, transform_indices = @transform_2, window_bounds = array<i64: 1, 512>}, {pipeline_mode = #tpu.pipeline_mode<synchronous>, transform_indices = @transform_3, window_bounds = array<i64: 512, 256>}, {pipeline_mode = #tpu.pipeline_mode<synchronous>, transform_indices = @transform_4, window_bounds = array<i64: 1, 256>}, {pipeline_mode = #tpu.pipeline_mode<synchronous>, transform_indices = @transform_5, window_bounds = array<i64: 256, 64>}, {pipeline_mode = #tpu.pipeline_mode<synchronous>, transform_indices = @transform_6, window_bounds = array<i64: 1, 64>}, {pipeline_mode = #tpu.pipeline_mode<synchronous>, transform_indices = @transform_7, window_bounds = array<i64: 64, 128>}, {pipeline_mode = #tpu.pipeline_mode<synchronous>, transform_indices = @transform_8, window_bounds = array<i64: 1, 128>}, {transform_indices = @transform_9, window_bounds = array<i64: 2, 128>}]} {
    %c0_i32 = arith.constant 0 : i32
    %0 = arith.cmpi eq, %arg1, %c0_i32 : i32
    %1 = arith.extui %0 : i1 to i32
    %c0_i32_0 = arith.constant 0 : i32
    %2 = arith.cmpi ne, %1, %c0_i32_0 : i32
    scf.if %2 {
      %cst_8 = arith.constant 0.000000e+00 : f32
      %12 = vector.broadcast %cst_8 : f32 to vector<2x64xf32>
      %c0_9 = arith.constant 0 : index
      %c0_10 = arith.constant 0 : index
      %13 = vector.load %arg12[%c0_9, %c0_10] : memref<2x64xf32, #tpu.memory_space<vmem>>, vector<2x64xf32>
      tpu.vector_store %arg12[%c0_9, %c0_10], %12 {strides = array<i32>} : memref<2x64xf32, #tpu.memory_space<vmem>>, vector<2x64xf32>,
    } else {
    }
    %c0 = arith.constant 0 : index
    %c0_1 = arith.constant 0 : index
    %c0_2 = arith.constant 0 : index
    %3 = vector.load %arg2[%c0, %c0_1, %c0_2] : memref<2x64x128xbf16, #tpu.memory_space<vmem>>, vector<2x64x128xbf16>
    %4 = arith.extf %3 : vector<2x64x128xbf16> to vector<2x64x128xf32>
    %c0_3 = arith.constant 0 : index
    %c0_4 = arith.constant 0 : index
    %5 = vector.load %arg12[%c0_3, %c0_4] : memref<2x64xf32, #tpu.memory_space<vmem>>, vector<2x64xf32>
    %cst = arith.constant dense<0.000000e+00> : vector<2x64xf32>
    %6 = vector.multi_reduction <add>, %4, %cst [2] : vector<2x64x128xf32> to vector<2x64xf32>
    %7 = arith.addf %5, %6 : vector<2x64xf32>
    %c0_5 = arith.constant 0 : index
    %c0_6 = arith.constant 0 : index
    %8 = vector.load %arg12[%c0_5, %c0_6] : memref<2x64xf32, #tpu.memory_space<vmem>>, vector<2x64xf32>
    tpu.vector_store %arg12[%c0_5, %c0_6], %7 {strides = array<i32>} : memref<2x64xf32, #tpu.memory_space<vmem>>, vector<2x64xf32>,
    %c2_i32 = arith.constant 2 : i32
    %9 = arith.cmpi eq, %arg1, %c2_i32 : i32
    %10 = arith.extui %9 : i1 to i32
    %c0_i32_7 = arith.constant 0 : i32
    %11 = arith.cmpi ne, %10, %c0_i32_7 : i32
    scf.if %11 {
      %c0_8 = arith.constant 0 : index
      %c0_9 = arith.constant 0 : index
      %12 = vector.load %arg12[%c0_8, %c0_9] : memref<2x64xf32, #tpu.memory_space<vmem>>, vector<2x64xf32>
      %cst_10 = arith.constant 0.00260416674 : f32
      %13 = vector.broadcast %cst_10 : f32 to vector<2x64xf32>
      %14 = arith.mulf %12, %13 : vector<2x64xf32>
      %15 = arith.truncf %14 : vector<2x64xf32> to vector<2x64xbf16>
      %c0_11 = arith.constant 0 : index
      %c0_12 = arith.constant 0 : index
      %16 = vector.load %arg3[%c0_11, %c0_12] : memref<64x512xbf16, #tpu.memory_space<vmem>>, vector<64x512xbf16>
      %cst_13 = arith.constant dense<0.000000e+00> : vector<2x512xf32>
      %17 = tpu.matmul %15, %16, %cst_13 {dimension_numbers = #tpu.dot_dimension_numbers<[1], [0], [0], [1], [0, 0, 1, 1], [], []>} : vector<2x64xbf16>, vector<64x512xbf16>, vector<2x512xf32> -> vector<2x512xf32>
      %c0_14 = arith.constant 0 : index
      %c0_15 = arith.constant 0 : index
      %18 = vector.load %arg4[%c0_14, %c0_15] : memref<1x512xf32, #tpu.memory_space<vmem>>, vector<1x512xf32>
      %19 = vector.broadcast %18 : vector<1x512xf32> to vector<2x512xf32>
      %20 = arith.addf %17, %19 : vector<2x512xf32>
      %cst_16 = arith.constant 0.000000e+00 : f32
      %21 = vector.broadcast %cst_16 : f32 to vector<2x512xf32>
      %22 = arith.cmpf oge, %20, %21 : vector<2x512xf32>
      %cst_17 = arith.constant 2.000000e-01 : f32
      %23 = vector.broadcast %cst_17 : f32 to vector<2x512xf32>
      %24 = arith.mulf %23, %20 : vector<2x512xf32>
      %25 = arith.select %22, %20, %24 : vector<2x512xi1>, vector<2x512xf32>
      %26 = arith.truncf %25 : vector<2x512xf32> to vector<2x512xbf16>
      %c0_18 = arith.constant 0 : index
      %c0_19 = arith.constant 0 : index
      %27 = vector.load %arg5[%c0_18, %c0_19] : memref<512x256xbf16, #tpu.memory_space<vmem>>, vector<512x256xbf16>
      %cst_20 = arith.constant dense<0.000000e+00> : vector<2x256xf32>
      %28 = tpu.matmul %26, %27, %cst_20 {dimension_numbers = #tpu.dot_dimension_numbers<[1], [0], [0], [1], [0, 0, 1, 1], [], []>} : vector<2x512xbf16>, vector<512x256xbf16>, vector<2x256xf32> -> vector<2x256xf32>
      %c0_21 = arith.constant 0 : index
      %c0_22 = arith.constant 0 : index
      %29 = vector.load %arg6[%c0_21, %c0_22] : memref<1x256xf32, #tpu.memory_space<vmem>>, vector<1x256xf32>
      %30 = vector.broadcast %29 : vector<1x256xf32> to vector<2x256xf32>
      %31 = arith.addf %28, %30 : vector<2x256xf32>
      %cst_23 = arith.constant 0.000000e+00 : f32
      %32 = vector.broadcast %cst_23 : f32 to vector<2x256xf32>
      %33 = arith.cmpf oge, %31, %32 : vector<2x256xf32>
      %cst_24 = arith.constant 1.000000e-01 : f32
      %34 = vector.broadcast %cst_24 : f32 to vector<2x256xf32>
      %35 = arith.mulf %34, %31 : vector<2x256xf32>
      %36 = arith.select %33, %31, %35 : vector<2x256xi1>, vector<2x256xf32>
      %37 = arith.truncf %36 : vector<2x256xf32> to vector<2x256xbf16>
      %c0_25 = arith.constant 0 : index
      %c0_26 = arith.constant 0 : index
      %38 = vector.load %arg7[%c0_25, %c0_26] : memref<256x64xbf16, #tpu.memory_space<vmem>>, vector<256x64xbf16>
      %cst_27 = arith.constant dense<0.000000e+00> : vector<2x64xf32>
      %39 = tpu.matmul %37, %38, %cst_27 {dimension_numbers = #tpu.dot_dimension_numbers<[1], [0], [0], [1], [0, 0, 1, 1], [], []>} : vector<2x256xbf16>, vector<256x64xbf16>, vector<2x64xf32> -> vector<2x64xf32>
      %c0_28 = arith.constant 0 : index
      %c0_29 = arith.constant 0 : index
      %40 = vector.load %arg8[%c0_28, %c0_29] : memref<1x64xf32, #tpu.memory_space<vmem>>, vector<1x64xf32>
      %41 = vector.broadcast %40 : vector<1x64xf32> to vector<2x64xf32>
      %42 = arith.addf %39, %41 : vector<2x64xf32>
      %cst_30 = arith.constant 0.000000e+00 : f32
      %43 = vector.broadcast %cst_30 : f32 to vector<2x64xf32>
      %44 = arith.cmpf oge, %42, %43 : vector<2x64xf32>
      %cst_31 = arith.constant 1.000000e-01 : f32
      %45 = vector.broadcast %cst_31 : f32 to vector<2x64xf32>
      %46 = arith.mulf %45, %42 : vector<2x64xf32>
      %47 = arith.select %44, %42, %46 : vector<2x64xi1>, vector<2x64xf32>
      %48 = arith.truncf %47 : vector<2x64xf32> to vector<2x64xbf16>
      %c0_32 = arith.constant 0 : index
      %c0_33 = arith.constant 0 : index
      %49 = vector.load %arg9[%c0_32, %c0_33] : memref<64x128xbf16, #tpu.memory_space<vmem>>, vector<64x128xbf16>
      %cst_34 = arith.constant dense<0.000000e+00> : vector<2x128xf32>
      %50 = tpu.matmul %48, %49, %cst_34 {dimension_numbers = #tpu.dot_dimension_numbers<[1], [0], [0], [1], [0, 0, 1, 1], [], []>} : vector<2x64xbf16>, vector<64x128xbf16>, vector<2x128xf32> -> vector<2x128xf32>
      %c0_35 = arith.constant 0 : index
      %c0_36 = arith.constant 0 : index
      %51 = vector.load %arg10[%c0_35, %c0_36] : memref<1x128xf32, #tpu.memory_space<vmem>>, vector<1x128xf32>
      %52 = vector.broadcast %51 : vector<1x128xf32> to vector<2x128xf32>
      %53 = arith.addf %50, %52 : vector<2x128xf32>
      %c0_37 = arith.constant 0 : index
      %c0_38 = arith.constant 0 : index
      %54 = vector.load %arg11[%c0_37, %c0_38] : memref<2x128xf32, #tpu.memory_space<vmem>>, vector<2x128xf32>
      tpu.vector_store %arg11[%c0_37, %c0_38], %53 {strides = array<i32>} : memref<2x128xf32, #tpu.memory_space<vmem>>, vector<2x128xf32>,
    } else {
    }
    return
  }
  func.func @transform_0(%arg0: i32, %arg1: i32) -> (i32, i32, i32) {
    %c0_i32 = arith.constant 0 : i32
    %c0_i32_0 = arith.constant 0 : i32
    return %arg0, %c0_i32, %arg1 : i32, i32, i32
  }
  func.func @transform_1(%arg0: i32, %arg1: i32) -> (i32, i32) {
    %c0_i32 = arith.constant 0 : i32
    %c0_i32_0 = arith.constant 0 : i32
    %c0_i32_1 = arith.constant 0 : i32
    return %c0_i32, %c0_i32_0 : i32, i32
  }
  func.func @transform_2(%arg0: i32, %arg1: i32) -> (i32, i32) {
    %c0_i32 = arith.constant 0 : i32
    %c0_i32_0 = arith.constant 0 : i32
    %c0_i32_1 = arith.constant 0 : i32
    return %c0_i32, %c0_i32_0 : i32, i32
  }
  func.func @transform_3(%arg0: i32, %arg1: i32) -> (i32, i32) {
    %c0_i32 = arith.constant 0 : i32
    %c0_i32_0 = arith.constant 0 : i32
    %c0_i32_1 = arith.constant 0 : i32
    return %c0_i32, %c0_i32_0 : i32, i32
  }
  func.func @transform_4(%arg0: i32, %arg1: i32) -> (i32, i32) {
    %c0_i32 = arith.constant 0 : i32
    %c0_i32_0 = arith.constant 0 : i32
    %c0_i32_1 = arith.constant 0 : i32
    return %c0_i32, %c0_i32_0 : i32, i32
  }
  func.func @transform_5(%arg0: i32, %arg1: i32) -> (i32, i32) {
    %c0_i32 = arith.constant 0 : i32
    %c0_i32_0 = arith.constant 0 : i32
    %c0_i32_1 = arith.constant 0 : i32
    return %c0_i32, %c0_i32_0 : i32, i32
  }
  func.func @transform_6(%arg0: i32, %arg1: i32) -> (i32, i32) {
    %c0_i32 = arith.constant 0 : i32
    %c0_i32_0 = arith.constant 0 : i32
    %c0_i32_1 = arith.constant 0 : i32
    return %c0_i32, %c0_i32_0 : i32, i32
  }
  func.func @transform_7(%arg0: i32, %arg1: i32) -> (i32, i32) {
    %c0_i32 = arith.constant 0 : i32
    %c0_i32_0 = arith.constant 0 : i32
    %c0_i32_1 = arith.constant 0 : i32
    return %c0_i32, %c0_i32_0 : i32, i32
  }
  func.func @transform_8(%arg0: i32, %arg1: i32) -> (i32, i32) {
    %c0_i32 = arith.constant 0 : i32
    %c0_i32_0 = arith.constant 0 : i32
    %c0_i32_1 = arith.constant 0 : i32
    return %c0_i32, %c0_i32_0 : i32, i32
  }
  func.func @transform_9(%arg0: i32, %arg1: i32) -> (i32, i32) {
    %c0_i32 = arith.constant 0 : i32
    %c0_i32_0 = arith.constant 0 : i32
    return %arg0, %c0_i32 : i32, i32
  }
}

</mosaic_0001>

<bundles_post_ra>
// kernel: tpu_custom_call.1
= control target key start
LH: loop header
LB: loop body
LE: loop exit
PB: predicated region body
PF: predicated region fallthrough
CT: control target
= control target key end

     0   :  { %s2817_s0 = inlined_call_operand.vmem [shape: bf16[2,64,384], index: 0, kind: input, shape index: {}]   ;;  %s2818_s1 = inlined_call_operand.hbm [shape: bf16[64,512], index: 1, kind: input, shape index: {}]   ;;  %s2819_s2 = inlined_call_operand.hbm [shape: f32[1,512], index: 2, kind: input, shape index: {}]   ;;  %s2820_s3 = inlined_call_operand.hbm [shape: bf16[512,256], index: 3, kind: input, shape index: {}]   ;;  %s2821_s4 = inlined_call_operand.vmem [shape: f32[1,256], index: 4, kind: input, shape index: {}]   ;;  %s2822_s5 = inlined_call_operand.vmem [shape: bf16[256,64], index: 5, kind: input, shape index: {}]   ;;  %s2823_s6 = inlined_call_operand.vmem [shape: f32[1,64], index: 6, kind: input, shape index: {}]   ;;  %s2824_s7 = inlined_call_operand.hbm [shape: bf16[64,128], index: 7, kind: input, shape index: {}]   ;;  %s2825_s8 = inlined_call_operand.vmem [shape: f32[1,128], index: 8, kind: input, shape index: {}]   ;;  %s2826_s9 = inlined_call_operand.hbm [shape: f32[2,128], index: 9, kind: output, shape index: {}]  }
   0x1   :  { %2829 = sst [smem:[#allocation19_spill]] %s2818_s1 }
   0x2   :  { %2830 = sst [smem:[#allocation20_spill]] %s2819_s2 }
   0x3   :  { %2831 = sst [smem:[#allocation21_spill]] %s2820_s3 }
   0x4   :  { %2832 = sst [smem:[#allocation22_spill]] %s2826_s9 }
   0x5   :  { %14 = vsyncpa [#allocation5], 0 }
   0x6   :  { %15 = vsyncpa [#allocation8], 0 }
   0x7   :  { %16 = vsyncpa [#allocation11], 0 }
   0x8   :  { %17 = vsyncpa [#allocation6], 0  ;;  %s2590_s30 = smov 0   ;;  %s2592_s10 = smov 0  }
   0x9   :  { %s2594_s11 = smov 0   ;;  %s2596_s12 = smov 0  }
   0xa   :  { %s2598_s13 = smov 0  }
   0xb LB: > { %s2827_s14 = sadd.s32 4294967295, %s2526_s13   ;;  %s32_s15 = sadd.s32 1, %s2522_s12  ;;  %s2526_s13 = sphi %s2598_s13, %s23_s13   ;;  %s2522_s12 = sphi %s2596_s12, %s2849_s12   ;;  %s2518_s11 = sphi %s2594_s11, %s2848_s11   ;;  %s2514_s10 = sphi %s2592_s10, %s2847_s10   ;;  %s2510_s30 = sphi %s2590_s30, %s2846_s30  }
   0xc   : > { %p33_p0 = scmp.ge.s32.totalorder %s32_s15, 3  ;;  %s44_s16 = sadd.s32 1, %s2514_s10 }
   0xd   : > { %p51_p1 = scmp.ne.s32.totalorder %s2514_s10, %s2510_s30  ;;  %p52_p2 = scmp.eq.s32.totalorder %s2526_s13, 0 }
   0xe   : > { %s2851_s15 = smov (%p33_p0, %s32_s15), 0  ;;  %p1663_p4 = scmp.ge.s32.totalorder %s2526_s13, 1 }
   0xf   : > { %2833 = sst [smem:[#allocation17_spill]] %s2851_s15  ;;  %p2623_p3 = por %p52_p2, %p51_p1 }
  0x10   : > { %s40_s18 = ssub.s32 %s2522_s12, %s2851_s15  ;;  %p262_p5 = scmp.lt.s32.totalorder %s2526_s13, 4 }
  0x11   : > { %p42_p6 = scmp.eq.s32.totalorder %s40_s18, 0  ;;  %p2637_p8 = scmp.eq.s32.totalorder %s2827_s14, 0 }
  0x12   : > { %p2631_p7 = pnand %p1663_p4, %p262_p5  ;;  %s2838_s2 = sld [smem:[#allocation20_spill]] }
  0x13   : > { %s2642_s21 = scalar_select %p42_p6, %s2514_s10, %s44_s16  }
  0x14   : > { %p2247_p9 = pneg %p2631_p7  ;;  %s2528_s26 = smov [#allocation7]  }
  0x15   : > { %2837 = sst [smem:[#allocation18_spill]] %s2642_s21  ;;  %s290_s27 = sshll.u32 %s2528_s26, 4  ;;  %s291_s27 = int_to_ptr.vmem [resolvable:$true] %s290_s27 }
  0x16   : > { %p2651_p10 = pnand %p2637_p8, %p2247_p9  ;;  %s2840_s1 = sld [smem:[#allocation19_spill]] }
  0x17   : > { %s2529_s18 = smov [#allocation4]   ;;  %s2841_s3 = sld [smem:[#allocation21_spill]] }
  0x18   : > { %s288_s24 = sshll.u32 %s2838_s2, 4  ;;  %s275_s22 = sshll.u32 %s2529_s18, 4  ;;  %s289_s24 = int_to_ptr.hbm [resolvable:$true] %s288_s24  ;;  %s276_s22 = int_to_ptr.vmem [resolvable:$true] %s275_s22 }
  0x19   : > { %2253 = dma.hbm_to_vmem [thread:$0]  (!%p2651_p10), %s289_s24, 64, %s291_s27, [#allocation8]  }
  0x1a   : > { %s2530_s15 = smov 256   ;;  %s2531_s21 = smov 16  }
  0x1b   : > { %s2532_s24 = smov [#allocation9]   ;;  %s2533_s27 = smov 128  }
  0x1c   : > { %s273_s16 = sshll.u32 %s2840_s1, 4  ;;  %s301_s26 = sshll.u32 %s2532_s24, 4  ;;  %s274_s16 = int_to_ptr.hbm [resolvable:$true] %s273_s16  ;;  %s302_s26 = int_to_ptr.vmem [resolvable:$true] %s301_s26 }
  0x1d   : > { %s299_s2 = sshll.u32 %s2841_s3, 4  ;;  %s2534_s28 = smov 8   ;;  %s300_s2 = int_to_ptr.hbm [resolvable:$true] %s299_s2 }
  0x1e   : > { %2250 = dma.hbm_to_vmem [thread:$0]  (!%p2651_p10), %s274_s16, 2048, %s276_s22, [#allocation5], %s2530_s15, %s2530_s15, %s2531_s21  }
  0x1f   : > { %2256 = dma.hbm_to_vmem [thread:$0]  (!%p2651_p10), %s300_s2, 8192, %s302_s26, [#allocation8], %s2533_s27, %s2533_s27, %s2534_s28  }
  0x20   : > { %s322_s1 = sshll.u32 %s2824_s7, 4  ;;  %s2535_s14 = smov [#allocation10]   ;;  %s323_s1 = int_to_ptr.hbm [resolvable:$true] %s322_s1 }
  0x21   : > { %s324_s23 = sshll.u32 %s2535_s14, 4  ;;  %s2536_s3 = smov 64   ;;  %s325_s23 = int_to_ptr.vmem [resolvable:$true] %s324_s23 }
  0x22   : > { %s2537_s9 = smov 4   ;;  %p1668_p11 = scmp.ge.s32.totalorder %s2526_s13, 3 }
  0x23   : > { %2259 = dma.hbm_to_vmem [thread:$0]  (!%p2651_p10), %s323_s1, 512, %s325_s23, [#allocation11], %s2536_s3, %s2536_s3, %s2537_s9  }
  0x24   : > { %337 = sbr.rel (%p1668_p11) target bundleno = 61 (0x3d), region = 48 }
  0x29   : > { %340 = sbr.rel (!%p2623_p3) target bundleno = 61 (0x3d), region = 52  ;;  %s342_s2 = sand.u32 (%p2623_p3), 1, %s2514_s10  }
  0x2a   : > { %s1670_s15 = sshll.u32 (%p2623_p3), %s2522_s12, 2  ;;  %s1669_s21 = sshll.u32 (%p2623_p3), %s342_s2, 6 }
  0x2b   : > { %s2680_s24 = scalar_lea.vmem (%p2623_p3), %s2817_s0, %s1670_s15  ;;  %s344_s1 = scalar_lea.vmem (%p2623_p3), [#allocation3], %s1669_s21 }
  0x2c   : > { %v366_v0 = vld [vmem:[%s2680_s24] sm:$0xf] (%p2623_p3)  ;;  %v368_v1 = vld [vmem:[%s2680_s24 + $0xc] sm:$0xf] (%p2623_p3)  ;;  %v370_v2 = vld [vmem:[%s2680_s24 + $0x18] sm:$0xf] (%p2623_p3) }
  0x2d   : > { %367 = vst [vmem:[%s344_s1] sm:$0xf] (%p2623_p3), %v366_v0  ;;  %v372_v3 = vld [vmem:[%s2680_s24 + $0x24] sm:$0xf] (%p2623_p3)  ;;  %v374_v4 = vld [vmem:[%s2680_s24 + $0x30] sm:$0xf] (%p2623_p3) }
  0x2e   : > { %369 = vst [vmem:[%s344_s1 + $0x4] sm:$0xf] %v368_v1  ;;  %v376_v5 = vld [vmem:[%s2680_s24 + $0x3c] sm:$0xf]  ;;  %v378_v6 = vld [vmem:[%s2680_s24 + $0x48] sm:$0xf] }
  0x2f   : > { %371 = vst [vmem:[%s344_s1 + $0x8] sm:$0xf] %v370_v2  ;;  %v380_v7 = vld [vmem:[%s2680_s24 + $0x54] sm:$0xf]  ;;  %v382_v8 = vld [vmem:[%s2680_s24 + $0x60] sm:$0xf] }
  0x30   : > { %373 = vst [vmem:[%s344_s1 + $0xc] sm:$0xf] %v372_v3  ;;  %v384_v9 = vld [vmem:[%s2680_s24 + $0x6c] sm:$0xf]  ;;  %v386_v10 = vld [vmem:[%s2680_s24 + $0x78] sm:$0xf] }
  0x31   : > { %375 = vst [vmem:[%s344_s1 + $0x10] sm:$0xf] %v374_v4  ;;  %v388_v11 = vld [vmem:[%s2680_s24 + $0x84] sm:$0xf]  ;;  %v390_v12 = vld [vmem:[%s2680_s24 + $0x90] sm:$0xf] }
  0x32   : > { %377 = vst [vmem:[%s344_s1 + $0x14] sm:$0xf] %v376_v5  ;;  %v392_v13 = vld [vmem:[%s2680_s24 + $0x9c] sm:$0xf]  ;;  %v394_v14 = vld [vmem:[%s2680_s24 + $0xa8] sm:$0xf] }
  0x33   : > { %379 = vst [vmem:[%s344_s1 + $0x18] sm:$0xf] %v378_v6  ;;  %v396_v15 = vld [vmem:[%s2680_s24 + $0xb4] sm:$0xf] }
  0x34   : > { %381 = vst [vmem:[%s344_s1 + $0x1c] sm:$0xf] %v380_v7 }
  0x35   : > { %383 = vst [vmem:[%s344_s1 + $0x20] sm:$0xf] %v382_v8 }
  0x36   : > { %385 = vst [vmem:[%s344_s1 + $0x24] sm:$0xf] %v384_v9 }
  0x37   : > { %387 = vst [vmem:[%s344_s1 + $0x28] sm:$0xf] %v386_v10 }
  0x38   : > { %389 = vst [vmem:[%s344_s1 + $0x2c] sm:$0xf] %v388_v11 }
  0x39   : > { %391 = vst [vmem:[%s344_s1 + $0x30] sm:$0xf] %v390_v12 }
  0x3a   : > { %393 = vst [vmem:[%s344_s1 + $0x34] sm:$0xf] %v392_v13 }
  0x3b   : > { %395 = vst [vmem:[%s344_s1 + $0x38] sm:$0xf] %v394_v14 }
  0x3c   : > { %397 = vst [vmem:[%s344_s1 + $0x3c] sm:$0xf] %v396_v15 }
  0x3d PF: > { %456 = sbr.rel (%p2631_p7) target bundleno = 858 (0x35a), region = 93  ;;  %s459_s3 = sand.u32 (!%p2631_p7), 1, %s2510_s30  }
  0x3e   : > { %s1672_s9 = sshll.u32 (!%p2631_p7), %s459_s3, 6 }
  0x3f   : > { %s2701_s17 = scalar_lea.vmem (!%p2631_p7), [#allocation3], %s1672_s9 }
  0x42   : > { %2493 = dma.done.wait (%p2637_p8), [#allocation5], 2048  }
  0x43   : > { %2495 = vsyncadd (%p2637_p8), [#allocation5], 4294965248 }
  0x44   : > { %2497 = dma.done.wait (%p2637_p8), [#allocation8], 8256  }
  0x45   : > { %2499 = vsyncadd (%p2637_p8), [#allocation8], 4294959040 }
  0x46   : > { %2501 = dma.done.wait (%p2637_p8), [#allocation11], 512  }
  0x47   : > { %2503 = vsyncadd (%p2637_p8), [#allocation11], 4294966784  ;;  %p1677_p12 = scmp.ne.s32.totalorder %s2518_s11, 0 }
  0x49   : > { %514 = sbr.rel (%p1677_p12) target bundleno = 80 (0x50), region = 117 }
  0x4e   : > { %vm515_vm0 = vcmask 517120   ;;  %v2538_v16 = vmov 0.0  }
  0x4f   : > { %516 = vst.msk [vmem:[#allocation2] sm:$0x3] %vm515_vm0, %v2538_v16 }
  0x50 PF: > { %v2223_v17 = vld [vmem:[%s2701_s17 + $0x20] sm:$0xff]   ;;  %v2220_v19 = vld [vmem:[%s2701_s17 + $0x8] sm:$0xff]   ;;  %v2221_v27 = vld [vmem:[%s2701_s17 + $0x10] sm:$0xff]   ;;  %v598_v49 = vlaneseq  ;;  %vm603_vm1 = vcmask 130112   ;;  %vm607_vm2 = vcmask 195712   ;;  %vm611_vm3 = vcmask 261312  }
  0x51   : > { %v2189_v18 = vld [vmem:[%s2701_s17] sm:$0xff]   ;;  %v2206_v20 = vunpack.c.l.bf16 %v2223_v17  ;;  %v2194_v22 = vunpack.c.l.bf16 %v2220_v19  ;;  %v2224_v23 = vld [vmem:[%s2701_s17 + $0x28] sm:$0xff]   ;;  %v2207_v24 = vunpack.c.h.bf16 %v2223_v17  ;;  %v2195_v29 = vunpack.c.h.bf16 %v2220_v19  ;;  %v2225_v31 = vld [vmem:[%s2701_s17 + $0x30] sm:$0xff]   ;;  %p1678_p13 = scmp.ne.s32.totalorder %s2518_s11, 2 }
  0x52   : > { %v2190_v21 = vunpack.c.l.bf16 %v2189_v18  ;;  %v2191_v25 = vunpack.c.h.bf16 %v2189_v18  ;;  %v2210_v26 = vunpack.c.l.bf16 %v2224_v23  ;;  %v2211_v28 = vunpack.c.h.bf16 %v2224_v23  ;;  %v2226_v35 = vld [vmem:[%s2701_s17 + $0x38] sm:$0xff]  }
  0x53   : > { %566 = vadd.xlane.f32.xlu1 %v2206_v20  ;;  %554 = vadd.xlane.f32.xlu2 %v2194_v22  ;;  %v2198_v30 = vunpack.c.l.bf16 %v2221_v27  ;;  %v2199_v32 = vunpack.c.h.bf16 %v2221_v27  ;;  %v2214_v33 = vunpack.c.l.bf16 %v2225_v31  ;;  %v2215_v34 = vunpack.c.h.bf16 %v2225_v31  ;;  %v2222_v36 = vld [vmem:[%s2701_s17 + $0x18] sm:$0xff]  }
  0x54   : > { %550 = vadd.xlane.f32.xlu0 %v2190_v21  ;;  %v2218_v37 = vunpack.c.l.bf16 %v2226_v35  ;;  %v2202_v38 = vunpack.c.l.bf16 %v2222_v36  ;;  %v2203_v39 = vunpack.c.h.bf16 %v2222_v36  ;;  %v2219_v40 = vunpack.c.h.bf16 %v2226_v35 }
  0x55   : > { %v599_v51 = vand.u32 127, %v598_v49  ;;  %vm615_vm4 = vcmask 326912   ;;  %vm619_vm5 = vcmask 392512   ;;  %vm623_vm6 = vcmask 458112  }
  0x56   : > { %vm627_vm7 = vcmask 523712   ;;  %vm644_vm8 = vcmask 1041409   ;;  %vm648_vm9 = vcmask 517120  }
  0x57   : > { %v601_v52 = vadd.s32 4294967288, %v599_v51  ;;  %v605_v55 = vadd.s32 4294967280, %v599_v51  ;;  %v609_v58 = vadd.s32 4294967272, %v599_v51  ;;  %v613_v63 = vadd.s32 4294967264, %v599_v51 }
  0x58   : > { %v617_v2 = vadd.s32 4294967256, %v599_v51  ;;  %v621_v4 = vadd.s32 4294967248, %v599_v51  ;;  %v625_v14 = vadd.s32 4294967240, %v599_v51 }
  0x5b   : > { %568 = vadd.xlane.f32.xlu1 %v2207_v24  ;;  %570 = vadd.xlane.f32.xlu2 %v2210_v26 }
  0x5c   : > { %552 = vadd.xlane.f32.xlu0 %v2191_v25 }
  0x63   : > { %572 = vadd.xlane.f32.xlu1 %v2211_v28  ;;  %558 = vadd.xlane.f32.xlu2 %v2198_v30  ;;  %v549_v30 = vld [vmem:[#allocation2] sm:$0x3] }
  0x64   : > { %556 = vadd.xlane.f32.xlu0 %v2195_v29 }
  0x6b   : > { %560 = vadd.xlane.f32.xlu1 %v2199_v32  ;;  %576 = vadd.xlane.f32.xlu2 %v2215_v34 }
  0x6c   : > { %574 = vadd.xlane.f32.xlu0 %v2214_v33 }
  0x73   : > { %578 = vadd.xlane.f32.xlu1 %v2218_v37  ;;  %564 = vadd.xlane.f32.xlu2 %v2203_v39 }
  0x74   : > { %562 = vadd.xlane.f32.xlu0 %v2202_v38 }
  0x7c   : > { %580 = vadd.xlane.f32.xlu0 %v2219_v40 }
  0xc6   : > { %v567_v41 = vpop.xlane.xlu1 %566  ;;  %v555_v43 = vpop.xlane.xlu2 %554 }
  0xc7   : > { %v551_v42 = vpop.xlane.xlu0 %550  ;;  %v629_v59 = vperm.slane %v567_v41, %v599_v51  ;;  %v606_v62 = vperm.slane %v555_v43, %v605_v55 }
  0xc8   : > { %v600_v60 = vperm.slane %v551_v42, %v599_v51 }
  0xce   : > { %v569_v44 = vpop.xlane.xlu1 %568  ;;  %v571_v46 = vpop.xlane.xlu2 %570 }
  0xcf   : > { %v553_v45 = vpop.xlane.xlu0 %552  ;;  %v630_v61 = vperm.slane %v569_v44, %v601_v52  ;;  %v632_v3 = vperm.slane %v571_v46, %v605_v55 }
  0xd0   : > { %v602_v57 = vperm.slane %v553_v45, %v601_v52 }
  0xd1   : > { %v631_v6 = vsel %vm603_vm1, %v630_v61, %v629_v59 }
  0xd2   : > { %v604_v0 = vsel %vm603_vm1, %v602_v57, %v600_v60  ;;  %v633_v15 = vsel %vm607_vm2, %v632_v3, %v631_v6 }
  0xd3   : > { %v608_v8 = vsel %vm607_vm2, %v606_v62, %v604_v0 }
  0xd6   : > { %v573_v47 = vpop.xlane.xlu1 %572  ;;  %v559_v50 = vpop.xlane.xlu2 %558 }
  0xd7   : > { %v557_v48 = vpop.xlane.xlu0 %556  ;;  %v634_v7 = vperm.slane %v573_v47, %v609_v58  ;;  %v614_v9 = vperm.slane %v559_v50, %v613_v63 }
  0xd8   : > { %v610_v1 = vperm.slane %v557_v48, %v609_v58 }
  0xd9   : > { %v635_v18 = vsel %vm611_vm3, %v634_v7, %v633_v15 }
  0xda   : > { %v612_v11 = vsel %vm611_vm3, %v610_v1, %v608_v8 }
  0xdb   : > { %v616_v20 = vsel %vm615_vm4, %v614_v9, %v612_v11 }
  0xde   : > { %v561_v54 = vpop.xlane.xlu1 %560  ;;  %v577_v56 = vpop.xlane.xlu2 %576 }
  0xdf   : > { %v575_v53 = vpop.xlane.xlu0 %574  ;;  %v618_v12 = vperm.slane %v561_v54, %v617_v2  ;;  %v638_v19 = vperm.slane %v577_v56, %v617_v2 }
  0xe0   : > { %v636_v10 = vperm.slane %v575_v53, %v613_v63 }
  0xe1   : > { %v620_v23 = vsel %vm619_vm5, %v618_v12, %v616_v20 }
  0xe2   : > { %v637_v21 = vsel %vm615_vm4, %v636_v10, %v635_v18 }
  0xe3   : > { %v639_v27 = vsel %vm619_vm5, %v638_v19, %v637_v21 }
  0xe6   : > { %v579_v13 = vpop.xlane.xlu1 %578  ;;  %v565_v17 = vpop.xlane.xlu2 %564 }
  0xe7   : > { %v563_v5 = vpop.xlane.xlu0 %562  ;;  %v640_v22 = vperm.slane %v579_v13, %v621_v4  ;;  %v626_v24 = vperm.slane %v565_v17, %v625_v14 }
  0xe8   : > { %v622_v16 = vperm.slane %v563_v5, %v621_v4 }
  0xe9   : > { %v641_v29 = vsel %vm623_vm6, %v640_v22, %v639_v27 }
  0xea   : > { %v624_v25 = vsel %vm623_vm6, %v622_v16, %v620_v23 }
  0xeb   : > { %v628_v31 = vsel %vm627_vm7, %v626_v24, %v624_v25 }
  0xef   : > { %v581_v26 = vpop.xlane.xlu0 %580 }
  0xf0   : > { %v642_v28 = vperm.slane %v581_v26, %v625_v14 }
  0xf2   : > { %v643_v32 = vsel %vm627_vm7, %v642_v28, %v641_v29  ;;  %653 = sbr.rel (%p1678_p13) target bundleno = 848 (0x350), region = 121 }
  0xf3   : > { %v645_v33 = vsel %vm644_vm8, %v643_v32, %v628_v31 }
  0xf4   : > { %v647_v34 = vadd.f32 %v645_v33, %v549_v30 }
  0xf6   : > { %649 = vst.msk [vmem:[#allocation2] sm:$0x3] %vm648_vm9, %v647_v34 }
  0xf7   : > { %v1729_v35 = vld [vmem:[#allocation4 + $0x60] sm:$0xf]  ;;  %v2102_v36 = vld [vmem:[#allocation4 + $0x6c] sm:$0xf0]  ;;  %v2100_v37 = vld [vmem:[#allocation4 + $0x64] sm:$0xf] }
  0xf8   : > { %v1730_v38 = vor.u32 %v2102_v36, %v1729_v35  ;;  %v1731_v39 = vld [vmem:[#allocation4 + $0x70] sm:$0xf0]  ;;  %v1737_v40 = vld [vmem:[#allocation4 + $0x68] sm:$0xf]  ;;  %v2103_v41 = vld [vmem:[#allocation4 + $0x74] sm:$0xf0] }
  0xf9   : > { %v1734_v42 = vor.u32 %v2100_v37, %v1731_v39  ;;  %v1738_v43 = vor.u32 %v2103_v41, %v1737_v40  ;;  %v1713_v44 = vld [vmem:[#allocation4 + $0x40] sm:$0xf]  ;;  %v2098_v45 = vld [vmem:[#allocation4 + $0x4c] sm:$0xf0]  ;;  %v2096_v46 = vld [vmem:[#allocation4 + $0x44] sm:$0xf] }
  0xfa   : > { %771 = vmatpush.bf16.msra.mxu3 %v1730_v38  ;;  %v1714_v47 = vor.u32 %v2098_v45, %v1713_v44  ;;  %v1715_v48 = vld [vmem:[#allocation4 + $0x50] sm:$0xf0]  ;;  %v1721_v49 = vld [vmem:[#allocation4 + $0x48] sm:$0xf]  ;;  %v2099_v50 = vld [vmem:[#allocation4 + $0x54] sm:$0xf0] }
  0xfb   : > { %784 = vmatpush.bf16.msra.mxu1 %v1734_v42  ;;  %797 = vmatpush.bf16.msra.mxu2 %v1738_v43  ;;  %v1718_v51 = vor.u32 %v2096_v46, %v1715_v48  ;;  %v1722_v52 = vor.u32 %v2099_v50, %v1721_v49  ;;  %v1697_v53 = vld [vmem:[#allocation4 + $0x20] sm:$0xf]  ;;  %v2094_v54 = vld [vmem:[#allocation4 + $0x2c] sm:$0xf0]  ;;  %v2092_v55 = vld [vmem:[#allocation4 + $0x24] sm:$0xf] }
  0xfc   : > { %v1699_v56 = vld [vmem:[#allocation4 + $0x30] sm:$0xf0]  ;;  %v1705_v57 = vld [vmem:[#allocation4 + $0x28] sm:$0xf]  ;;  %v2095_v58 = vld [vmem:[#allocation4 + $0x34] sm:$0xf0]  ;;  %v1698_v59 = vor.u32 %v2094_v54, %v1697_v53 }
  0xfd   : > { %v1681_v60 = vld [vmem:[#allocation4] sm:$0xf]  ;;  %v1702_v61 = vor.u32 %v2092_v55, %v1699_v56  ;;  %v1706_v62 = vor.u32 %v2095_v58, %v1705_v57  ;;  %v2090_v63 = vld [vmem:[#allocation4 + $0xc] sm:$0xf0]  ;;  %v2088_v0 = vld [vmem:[#allocation4 + $0x4] sm:$0xf] }
  0xfe   : > { %772 = vmatpush.bf16.msra.mxu3 %v1714_v47  ;;  %v654_v1 = vld [vmem:[#allocation2] sm:$0x3]  ;;  %v1683_v2 = vld [vmem:[#allocation4 + $0x10] sm:$0xf0]  ;;  %v1689_v3 = vld [vmem:[#allocation4 + $0x8] sm:$0xf]  ;;  %v1682_v8 = vor.u32 %v2090_v63, %v1681_v60 }
  0xff   : > { %785 = vmatpush.bf16.msra.mxu1 %v1718_v51  ;;  %798 = vmatpush.bf16.msra.mxu2 %v1722_v52  ;;  %v2091_v4 = vld [vmem:[#allocation4 + $0x14] sm:$0xf0]  ;;  %v655_v5 = vmul.f32 0.0026041667, %v654_v1  ;;  %v2101_v6 = vld [vmem:[#allocation4 + $0x6c] sm:$0xf]  ;;  %v1686_v10 = vor.u32 %v2088_v0, %v1683_v2 }
 0x100   : > { %v1739_v7 = vld [vmem:[#allocation4 + $0x78] sm:$0xf0]  ;;  %v1869_v9 = vld [vmem:[#allocation9 + $0xf0] sm:$0xf]  ;;  %v1690_v11 = vor.u32 %v2091_v4, %v1689_v3  ;;  %v2097_v12 = vld [vmem:[#allocation4 + $0x4c] sm:$0xf] }
 0x101   : > { %v1723_v13 = vld [vmem:[#allocation4 + $0x58] sm:$0xf0]  ;;  %v1742_v15 = vor.u32 %v2101_v6, %v1739_v7  ;;  %v1805_v17 = vld [vmem:[#allocation9 + $0x70] sm:$0xf]  ;;  %v2729_v20 = vpack.c.bf16 %v655_v5, %v655_v5  ;;  %v1861_v21 = vld [vmem:[#allocation9 + $0xe0] sm:$0xf] }
 0x102   : > { %773 = vmatpush.bf16.msra.mxu3 %v1698_v59  ;;  %v2135_v14 = vld [vmem:[#allocation9 + $0xf4] sm:$0xf0]  ;;  %v1933_v19 = vld [vmem:[#allocation9 + $0x170] sm:$0xf]  ;;  %v2133_v22 = vld [vmem:[#allocation9 + $0xe4] sm:$0xf0]  ;;  %v1726_v28 = vor.u32 %v2097_v12, %v1723_v13 }
 0x103   : > { %786 = vmatpush.bf16.msra.mxu1 %v1702_v61  ;;  %799 = vmatpush.bf16.msra.mxu2 %v1706_v62  ;;  %v1870_v16 = vor.u32 %v2135_v14, %v1869_v9  ;;  %v2119_v18 = vld [vmem:[#allocation9 + $0x74] sm:$0xf0]  ;;  %vm763_vm10 = vcmask 523264   ;;  %v1797_v25 = vld [vmem:[#allocation9 + $0x60] sm:$0xf]  ;;  %v1862_v30 = vor.u32 %v2133_v22, %v1861_v21 }
 0x104   : > { %v1806_v23 = vor.u32 %v2119_v18, %v1805_v17  ;;  %v2151_v24 = vld [vmem:[#allocation9 + $0x174] sm:$0xf0]  ;;  %v2117_v26 = vld [vmem:[#allocation9 + $0x64] sm:$0xf0]  ;;  %v1925_v31 = vld [vmem:[#allocation9 + $0x160] sm:$0xf] }
 0x105   : > { %v1934_v27 = vor.u32 %v2151_v24, %v1933_v19  ;;  %v2093_v29 = vld [vmem:[#allocation4 + $0x2c] sm:$0xf]  ;;  %v1707_v33 = vld [vmem:[#allocation4 + $0x38] sm:$0xf0]  ;;  %v1853_v34 = vld [vmem:[#allocation9 + $0xd0] sm:$0xf]  ;;  %v1798_v36 = vor.u32 %v2117_v26, %v1797_v25 }
 0x106   : > { %774 = vmatpush.bf16.msra.mxu3 %v1682_v8  ;;  %v2149_v32 = vld [vmem:[#allocation9 + $0x164] sm:$0xf0]  ;;  %1225 = vmatpush.bf16.msra.mxu0 %v1806_v23  ;;  %v2131_v35 = vld [vmem:[#allocation9 + $0xd4] sm:$0xf0]  ;;  %v1789_v37 = vld [vmem:[#allocation9 + $0x50] sm:$0xf]  ;;  %v1710_v41 = vor.u32 %v2093_v29, %v1707_v33 }
 0x107   : > { %787 = vmatpush.bf16.msra.mxu1 %v1686_v10  ;;  %800 = vmatpush.bf16.msra.mxu2 %v1690_v11  ;;  %v2115_v38 = vld [vmem:[#allocation9 + $0x54] sm:$0xf0]  ;;  %v2089_v39 = vld [vmem:[#allocation4 + $0xc] sm:$0xf]  ;;  %v1926_v40 = vor.u32 %v2149_v32, %v1925_v31  ;;  %v1854_v43 = vor.u32 %v2131_v35, %v1853_v34  ;;  %v1917_v44 = vld [vmem:[#allocation9 + $0x150] sm:$0xf] }
 0x108   : > { %v1691_v42 = vld [vmem:[#allocation4 + $0x18] sm:$0xf0]  ;;  %v1845_v46 = vld [vmem:[#allocation9 + $0xc0] sm:$0xf]  ;;  %v2129_v47 = vld [vmem:[#allocation9 + $0xc4] sm:$0xf0]  ;;  %v1790_v48 = vor.u32 %v2115_v38, %v1789_v37 }
 0x109   : > { %1743 = vmatmul.msk.bf16.vlgmr.msra.gmra.mxu3 %vm763_vm10, %v2729_v20  ;;  %v2147_v45 = vld [vmem:[#allocation9 + $0x154] sm:$0xf0]  ;;  %v1781_v49 = vld [vmem:[#allocation9 + $0x40] sm:$0xf]  ;;  %v2113_v50 = vld [vmem:[#allocation9 + $0x44] sm:$0xf0]  ;;  %v1694_v54 = vor.u32 %v2089_v39, %v1691_v42  ;;  %v1846_v55 = vor.u32 %v2129_v47, %v1845_v46 }
 0x10a   : > { %810 = vmatpush.bf16.msrb.mxu3 %v1742_v15  ;;  %1744 = vmatmul.msk.bf16.vlgmr.msra.gmra.mxu1 %vm763_vm10, %v2729_v20  ;;  %v1997_v51 = vld [vmem:[#allocation9 + $0x1f0] sm:$0xf]  ;;  %v2167_v52 = vld [vmem:[#allocation9 + $0x1f4] sm:$0xf0]  ;;  %v1918_v53 = vor.u32 %v2147_v45, %v1917_v44  ;;  %v1909_v56 = vld [vmem:[#allocation9 + $0x140] sm:$0xf]  ;;  %v1782_v60 = vor.u32 %v2113_v50, %v1781_v49 }
 0x10b   : > { %1238 = vmatpush.bf16.msrb.mxu1 %v1870_v16  ;;  %1745 = vmatmul.msk.bf16.vlgmr.msra.gmra.mxu2 %vm763_vm10, %v2729_v20  ;;  %v2145_v57 = vld [vmem:[#allocation9 + $0x144] sm:$0xf0]  ;;  %v1837_v58 = vld [vmem:[#allocation9 + $0xb0] sm:$0xf]  ;;  %v2127_v59 = vld [vmem:[#allocation9 + $0xb4] sm:$0xf0]  ;;  %v1998_v61 = vor.u32 %v2167_v52, %v1997_v51 }
 0x10c   : > { %1251 = vmatpush.bf16.msrb.mxu2 %v1934_v27  ;;  %1226 = vmatpush.bf16.msra.mxu0 %v1798_v36  ;;  %v1773_v62 = vld [vmem:[#allocation9 + $0x30] sm:$0xf]  ;;  %v2111_v63 = vld [vmem:[#allocation9 + $0x34] sm:$0xf0]  ;;  %v1910_v0 = vor.u32 %v2145_v57, %v1909_v56  ;;  %v1989_v1 = vld [vmem:[#allocation9 + $0x1e0] sm:$0xf]  ;;  %v1838_v3 = vor.u32 %v2127_v59, %v1837_v58 }
 0x10d   : > { %v2165_v2 = vld [vmem:[#allocation9 + $0x1e4] sm:$0xf0]  ;;  %v1901_v4 = vld [vmem:[#allocation9 + $0x130] sm:$0xf]  ;;  %v2143_v5 = vld [vmem:[#allocation9 + $0x134] sm:$0xf0]  ;;  %v1774_v8 = vor.u32 %v2111_v63, %v1773_v62 }
 0x10e   : > { %811 = vmatpush.bf16.msrb.mxu3 %v1726_v28  ;;  %v1829_v6 = vld [vmem:[#allocation9 + $0xa0] sm:$0xf]  ;;  %v2125_v7 = vld [vmem:[#allocation9 + $0xa4] sm:$0xf0]  ;;  %v1990_v11 = vor.u32 %v2165_v2, %v1989_v1  ;;  %v1902_v12 = vor.u32 %v2143_v5, %v1901_v4  ;;  %v1981_v14 = vld [vmem:[#allocation9 + $0x1d0] sm:$0xf] }
 0x10f   : > { %1239 = vmatpush.bf16.msrb.mxu1 %v1862_v30  ;;  %v1765_v9 = vld [vmem:[#allocation9 + $0x20] sm:$0xf]  ;;  %v2109_v10 = vld [vmem:[#allocation9 + $0x24] sm:$0xf0]  ;;  %v2163_v15 = vld [vmem:[#allocation9 + $0x1d4] sm:$0xf0]  ;;  %v1830_v16 = vor.u32 %v2125_v7, %v1829_v6 }
 0x110   : > { %1252 = vmatpush.bf16.msrb.mxu2 %v1926_v40  ;;  %1227 = vmatpush.bf16.msra.mxu0 %v1790_v48  ;;  %v1893_v13 = vld [vmem:[#allocation9 + $0x120] sm:$0xf]  ;;  %v2141_v17 = vld [vmem:[#allocation9 + $0x124] sm:$0xf0]  ;;  %v1821_v18 = vld [vmem:[#allocation9 + $0x90] sm:$0xf]  ;;  %v1766_v21 = vor.u32 %v2109_v10, %v1765_v9  ;;  %v1982_v24 = vor.u32 %v2163_v15, %v1981_v14 }
 0x111   : > { %v2123_v19 = vld [vmem:[#allocation9 + $0x94] sm:$0xf0]  ;;  %v1757_v22 = vld [vmem:[#allocation9 + $0x10] sm:$0xf]  ;;  %v1894_v25 = vor.u32 %v2141_v17, %v1893_v13  ;;  %v1973_v26 = vld [vmem:[#allocation9 + $0x1c0] sm:$0xf] }
 0x112   : > { %812 = vmatpush.bf16.msrb.mxu3 %v1710_v41  ;;  %v2107_v23 = vld [vmem:[#allocation9 + $0x14] sm:$0xf0]  ;;  %v2161_v27 = vld [vmem:[#allocation9 + $0x1c4] sm:$0xf0]  ;;  %v1822_v28 = vor.u32 %v2123_v19, %v1821_v18  ;;  %v1885_v29 = vld [vmem:[#allocation9 + $0x110] sm:$0xf] }
 0x113   : > { %1240 = vmatpush.bf16.msrb.mxu1 %v1854_v43  ;;  %v2139_v30 = vld [vmem:[#allocation9 + $0x114] sm:$0xf0]  ;;  %v1813_v31 = vld [vmem:[#allocation9 + $0x80] sm:$0xf]  ;;  %v2121_v32 = vld [vmem:[#allocation9 + $0x84] sm:$0xf0]  ;;  %v1758_v33 = vor.u32 %v2107_v23, %v1757_v22  ;;  %v1974_v37 = vor.u32 %v2161_v27, %v1973_v26 }
 0x114   : > { %1253 = vmatpush.bf16.msrb.mxu2 %v1918_v53  ;;  %1228 = vmatpush.bf16.msra.mxu0 %v1782_v60  ;;  %v1871_v34 = vld [vmem:[#allocation9 + $0xf8] sm:$0xf0]  ;;  %v1749_v35 = vld [vmem:[#allocation9] sm:$0xf]  ;;  %v2105_v36 = vld [vmem:[#allocation9 + $0x4] sm:$0xf0]  ;;  %v1886_v38 = vor.u32 %v2139_v30, %v1885_v29  ;;  %v1814_v41 = vor.u32 %v2121_v32, %v1813_v31 }
 0x115   : > { %v2118_v39 = vld [vmem:[#allocation9 + $0x74] sm:$0xf]  ;;  %v1807_v40 = vld [vmem:[#allocation9 + $0x78] sm:$0xf0]  ;;  %v1877_v42 = vld [vmem:[#allocation9 + $0x100] sm:$0xf]  ;;  %v1750_v45 = vor.u32 %v2105_v36, %v1749_v35 }
 0x116   : > { %813 = vmatpush.bf16.msrb.mxu3 %v1694_v54  ;;  %v2137_v43 = vld [vmem:[#allocation9 + $0x104] sm:$0xf0]  ;;  %v2150_v46 = vld [vmem:[#allocation9 + $0x174] sm:$0xf]  ;;  %v1935_v47 = vld [vmem:[#allocation9 + $0x178] sm:$0xf0]  ;;  %v1810_v50 = vor.u32 %v2118_v39, %v1807_v40 }
 0x117   : > { %1241 = vmatpush.bf16.msrb.mxu1 %v1846_v55  ;;  %v2132_v48 = vld [vmem:[#allocation9 + $0xe4] sm:$0xf]  ;;  %v1863_v49 = vld [vmem:[#allocation9 + $0xe8] sm:$0xf0]  ;;  %v1878_v51 = vor.u32 %v2137_v43, %v1877_v42  ;;  %v1938_v52 = vor.u32 %v2150_v46, %v1935_v47  ;;  %v2130_v54 = vld [vmem:[#allocation9 + $0xd4] sm:$0xf] }
 0x118   : > { %1254 = vmatpush.bf16.msrb.mxu2 %v1910_v0  ;;  %1229 = vmatpush.bf16.msra.mxu0 %v1774_v8  ;;  %v1866_v53 = vor.u32 %v2132_v48, %v1863_v49  ;;  %v1855_v55 = vld [vmem:[#allocation9 + $0xd8] sm:$0xf0]  ;;  %v1965_v57 = vld [vmem:[#allocation9 + $0x1b0] sm:$0xf]  ;;  %v2159_v58 = vld [vmem:[#allocation9 + $0x1b4] sm:$0xf0] }
 0x119   : > { %1746 = vmatmul.msk.bf16.vlgmr.msrb.gmra.mxu3 %vm763_vm10, %v2729_v20  ;;  %v2134_v20 = vld [vmem:[#allocation9 + $0xf4] sm:$0xf]  ;;  %v1858_v56 = vor.u32 %v2130_v54, %v1855_v55  ;;  %v1966_v59 = vor.u32 %v2159_v58, %v1965_v57  ;;  %v2116_v60 = vld [vmem:[#allocation9 + $0x64] sm:$0xf]  ;;  %v1927_v0 = vld [vmem:[#allocation9 + $0x168] sm:$0xf0] }
 0x11a   : > { %1264 = vmatpush.bf16.msra.mxu3 %v1998_v61  ;;  %v1874_v44 = vor.u32 %v2134_v20, %v1871_v34  ;;  %v1799_v61 = vld [vmem:[#allocation9 + $0x68] sm:$0xf0]  ;;  %v2148_v62 = vld [vmem:[#allocation9 + $0x164] sm:$0xf]  ;;  %v1957_v5 = vld [vmem:[#allocation9 + $0x1a0] sm:$0xf] }
 0x11b   : > { %1242 = vmatpush.bf16.msrb.mxu1 %v1838_v3  ;;  %v1802_v63 = vor.u32 %v2116_v60, %v1799_v61  ;;  %v1930_v1 = vor.u32 %v2148_v62, %v1927_v0  ;;  %v2128_v2 = vld [vmem:[#allocation9 + $0xc4] sm:$0xf]  ;;  %v1847_v3 = vld [vmem:[#allocation9 + $0xc8] sm:$0xf0]  ;;  %v2157_v6 = vld [vmem:[#allocation9 + $0x1a4] sm:$0xf0] }
 0x11c   : > { %1255 = vmatpush.bf16.msrb.mxu2 %v1902_v12  ;;  %1230 = vmatpush.bf16.msra.mxu0 %v1766_v21  ;;  %v1850_v4 = vor.u32 %v2128_v2, %v1847_v3  ;;  %v1958_v7 = vor.u32 %v2157_v6, %v1957_v5  ;;  %v2114_v8 = vld [vmem:[#allocation9 + $0x54] sm:$0xf]  ;;  %v1791_v9 = vld [vmem:[#allocation9 + $0x58] sm:$0xf0]  ;;  %v1949_v17 = vld [vmem:[#allocation9 + $0x190] sm:$0xf] }
 0x11d   : > { %v2146_v10 = vld [vmem:[#allocation9 + $0x154] sm:$0xf]  ;;  %v1919_v12 = vld [vmem:[#allocation9 + $0x158] sm:$0xf0]  ;;  %v2155_v18 = vld [vmem:[#allocation9 + $0x194] sm:$0xf0] }
 0x11e   : > { %1265 = vmatpush.bf16.msra.mxu3 %v1990_v11  ;;  %v1794_v11 = vor.u32 %v2114_v8, %v1791_v9  ;;  %v1922_v13 = vor.u32 %v2146_v10, %v1919_v12  ;;  %v2126_v14 = vld [vmem:[#allocation9 + $0xb4] sm:$0xf]  ;;  %v1839_v15 = vld [vmem:[#allocation9 + $0xb8] sm:$0xf0]  ;;  %v1950_v19 = vor.u32 %v2155_v18, %v1949_v17  ;;  %v2112_v21 = vld [vmem:[#allocation9 + $0x44] sm:$0xf] }
 0x11f   : > { %1243 = vmatpush.bf16.msrb.mxu1 %v1830_v16  ;;  %v1842_v16 = vor.u32 %v2126_v14, %v1839_v15  ;;  %v1783_v22 = vld [vmem:[#allocation9 + $0x48] sm:$0xf0]  ;;  %v2144_v23 = vld [vmem:[#allocation9 + $0x144] sm:$0xf]  ;;  %v1941_v30 = vld [vmem:[#allocation9 + $0x180] sm:$0xf] }
 0x120   : > { %1256 = vmatpush.bf16.msrb.mxu2 %v1894_v25  ;;  %1231 = vmatpush.bf16.msra.mxu0 %v1758_v33  ;;  %v1911_v25 = vld [vmem:[#allocation9 + $0x148] sm:$0xf0]  ;;  %v2124_v26 = vld [vmem:[#allocation9 + $0xa4] sm:$0xf]  ;;  %v2153_v31 = vld [vmem:[#allocation9 + $0x184] sm:$0xf0] }
 0x121   : > { %v1831_v27 = vld [vmem:[#allocation9 + $0xa8] sm:$0xf0]  ;;  %v1942_v32 = vor.u32 %v2153_v31, %v1941_v30  ;;  %v2110_v20 = vld [vmem:[#allocation9 + $0x34] sm:$0xf]  ;;  %v1775_v33 = vld [vmem:[#allocation9 + $0x38] sm:$0xf0] }
 0x122   : > { %1266 = vmatpush.bf16.msra.mxu3 %v1982_v24  ;;  %v1786_v24 = vor.u32 %v2112_v21, %v1783_v22  ;;  %v1834_v29 = vor.u32 %v2124_v26, %v1831_v27  ;;  %v2142_v34 = vld [vmem:[#allocation9 + $0x134] sm:$0xf]  ;;  %v1778_v35 = vor.u32 %v2110_v20, %v1775_v33  ;;  %v1903_v36 = vld [vmem:[#allocation9 + $0x138] sm:$0xf0]  ;;  %v2108_v43 = vld [vmem:[#allocation9 + $0x24] sm:$0xf] }
 0x123   : > { %1244 = vmatpush.bf16.msrb.mxu1 %v1822_v28  ;;  %v1914_v28 = vor.u32 %v2144_v23, %v1911_v25  ;;  %v1906_v39 = vor.u32 %v2142_v34, %v1903_v36  ;;  %v1823_v42 = vld [vmem:[#allocation9 + $0x98] sm:$0xf0]  ;;  %v2140_v46 = vld [vmem:[#allocation9 + $0x124] sm:$0xf]  ;;  %v1895_v47 = vld [vmem:[#allocation9 + $0x128] sm:$0xf0] }
 0x124   : > { %1257 = vmatpush.bf16.msrb.mxu2 %v1886_v38  ;;  %1232 = vmatpush.bf16.msra.mxu0 %v1750_v45  ;;  %v1999_v38 = vld [vmem:[#allocation9 + $0x1f8] sm:$0xf0]  ;;  %v1767_v45 = vld [vmem:[#allocation9 + $0x28] sm:$0xf0]  ;;  %v1898_v49 = vor.u32 %v2140_v46, %v1895_v47  ;;  %v2138_v58 = vld [vmem:[#allocation9 + $0x114] sm:$0xf] }
 0x125   : > { %v1770_v48 = vor.u32 %v2108_v43, %v1767_v45  ;;  %v1815_v54 = vld [vmem:[#allocation9 + $0x88] sm:$0xf0]  ;;  %v1759_v57 = vld [vmem:[#allocation9 + $0x18] sm:$0xf0]  ;;  %v2162_v61 = vld [vmem:[#allocation9 + $0x1d4] sm:$0xf] }
 0x126   : > { %1267 = vmatpush.bf16.msra.mxu3 %v1974_v37  ;;  %v2166_v37 = vld [vmem:[#allocation9 + $0x1f4] sm:$0xf]  ;;  %v1887_v60 = vld [vmem:[#allocation9 + $0x118] sm:$0xf0]  ;;  %v1751_v2 = vld [vmem:[#allocation9 + $0x8] sm:$0xf0] }
 0x127   : > { %1245 = vmatpush.bf16.msrb.mxu1 %v1814_v41  ;;  %v2002_v40 = vor.u32 %v2166_v37, %v1999_v38  ;;  %v2122_v41 = vld [vmem:[#allocation9 + $0x94] sm:$0xf]  ;;  %v1983_v62 = vld [vmem:[#allocation9 + $0x1d8] sm:$0xf0]  ;;  %v2136_v3 = vld [vmem:[#allocation9 + $0x104] sm:$0xf] }
 0x128   : > { %1277 = vmatpush.bf16.msrb.mxu0 %v1810_v50  ;;  %1258 = vmatpush.bf16.msrb.mxu2 %v1878_v51  ;;  %v2164_v50 = vld [vmem:[#allocation9 + $0x1e4] sm:$0xf]  ;;  %v1991_v51 = vld [vmem:[#allocation9 + $0x1e8] sm:$0xf0]  ;;  %v1986_v0 = vor.u32 %v2162_v61, %v1983_v62  ;;  %v673_v8 = vld [vmem:[#allocation7] sm:$0xf] }
 0x129   : > { %v1879_v5 = vld [vmem:[#allocation9 + $0x108] sm:$0xf0]  ;;  %v2160_v6 = vld [vmem:[#allocation9 + $0x1c4] sm:$0xf]  ;;  %v1967_v12 = vld [vmem:[#allocation9 + $0x1b8] sm:$0xf0] }
 0x12a   : > { %1268 = vmatpush.bf16.msra.mxu3 %v1966_v59  ;;  %v1882_v9 = vor.u32 %v2136_v3, %v1879_v5  ;;  %v2156_v15 = vld [vmem:[#allocation9 + $0x1a4] sm:$0xf]  ;;  %v2154_v21 = vld [vmem:[#allocation9 + $0x194] sm:$0xf]  ;;  %v1951_v22 = vld [vmem:[#allocation9 + $0x198] sm:$0xf0] }
 0x12b   : > { %1290 = vmatpush.bf16.msra.mxu1 %v1874_v44  ;;  %v1826_v44 = vor.u32 %v2122_v41, %v1823_v42  ;;  %v675_v23 = vperm.slane %v673_v8, 0  ;;  %v677_v25 = vperm.slane %v673_v8, 2  ;;  %v1954_v26 = vor.u32 %v2154_v21, %v1951_v22  ;;  %v1943_v30 = vld [vmem:[#allocation9 + $0x188] sm:$0xf0]  ;;  %v2168_v61 = vld [vmem:[%s2822_s5] sm:$0xff] }
 0x12c   : > { %1303 = vmatpush.bf16.msra.mxu2 %v1938_v52  ;;  %1278 = vmatpush.bf16.msrb.mxu0 %v1802_v63  ;;  %v2120_v52 = vld [vmem:[#allocation9 + $0x84] sm:$0xf]  ;;  %v1890_v63 = vor.u32 %v2138_v58, %v1887_v60  ;;  %v2182_v58 = vld [vmem:[%s2822_s5 + $0x70] sm:$0xff]  ;;  %v2180_v62 = vld [vmem:[%s2822_s5 + $0x60] sm:$0xff] }
 0x12d   : > { %v1818_v55 = vor.u32 %v2120_v52, %v1815_v54  ;;  %v2174_v52 = vld [vmem:[%s2822_s5 + $0x30] sm:$0xff]  ;;  %v2172_v54 = vld [vmem:[%s2822_s5 + $0x20] sm:$0xff]  ;;  %v2181_v60 = vld [vmem:[%s2822_s5 + $0x68] sm:$0xff] }
 0x12e   : > { %1269 = vmatpush.bf16.msra.mxu3 %v1958_v7  ;;  %v1975_v7 = vld [vmem:[#allocation9 + $0x1c8] sm:$0xf0] }
 0x12f   : > { %1291 = vmatpush.bf16.msra.mxu1 %v1866_v53  ;;  %v1994_v53 = vor.u32 %v2164_v50, %v1991_v51  ;;  %v1978_v10 = vor.u32 %v2160_v6, %v1975_v7  ;;  %v2175_v51 = vld [vmem:[%s2822_s5 + $0x38] sm:$0xff]  ;;  %v899_v6 = vld [vmem:[%s2821_s4] sm:$0x3] }
 0x130   : > { %1304 = vmatpush.bf16.msra.mxu2 %v1930_v1  ;;  %1279 = vmatpush.bf16.msrb.mxu0 %v1794_v11  ;;  %v2104_v1 = vld [vmem:[#allocation9 + $0x4] sm:$0xf]  ;;  %v2158_v11 = vld [vmem:[#allocation9 + $0x1b4] sm:$0xf] }
 0x131   : > { %v1970_v14 = vor.u32 %v2158_v11, %v1967_v12 }
 0x132   : > { %1270 = vmatpush.bf16.msra.mxu3 %v1950_v19 }
 0x133   : > { %1292 = vmatpush.bf16.msra.mxu1 %v1858_v56  ;;  %v2106_v56 = vld [vmem:[#allocation9 + $0x14] sm:$0xf] }
 0x134   : > { %1305 = vmatpush.bf16.msra.mxu2 %v1922_v13  ;;  %1280 = vmatpush.bf16.msrb.mxu0 %v1786_v24  ;;  %v1762_v59 = vor.u32 %v2106_v56, %v1759_v57  ;;  %v676_v13 = vperm.slane %v673_v8, 1  ;;  %v2183_v56 = vld [vmem:[%s2822_s5 + $0x78] sm:$0xff]  ;;  %v2170_v57 = vld [vmem:[%s2822_s5 + $0x10] sm:$0xff] }
 0x136   : > { %1271 = vmatpush.bf16.msra.mxu3 %v1942_v32 }
 0x137   : > { %1293 = vmatpush.bf16.msra.mxu1 %v1850_v4  ;;  %v1754_v4 = vor.u32 %v2104_v1, %v1751_v2  ;;  %v2178_v2 = vld [vmem:[%s2822_s5 + $0x50] sm:$0xff] }
 0x138   : > { %1306 = vmatpush.bf16.msra.mxu2 %v1914_v28  ;;  %1281 = vmatpush.bf16.msrb.mxu0 %v1778_v35 }
 0x13a   : > { %1316 = vmatpush.bf16.msrb.mxu3 %v2002_v40 }
 0x13b   : > { %1294 = vmatpush.bf16.msra.mxu1 %v1842_v16  ;;  %v1959_v16 = vld [vmem:[#allocation9 + $0x1a8] sm:$0xf0] }
 0x13c   : > { %1307 = vmatpush.bf16.msra.mxu2 %v1906_v39  ;;  %1282 = vmatpush.bf16.msrb.mxu0 %v1770_v48  ;;  %v1962_v18 = vor.u32 %v2156_v15, %v1959_v16 }
 0x13e   : > { %1317 = vmatpush.bf16.msrb.mxu3 %v1994_v53  ;;  %v2173_v53 = vld [vmem:[%s2822_s5 + $0x28] sm:$0xff] }
 0x13f   : > { %1295 = vmatpush.bf16.msra.mxu1 %v1834_v29  ;;  %v2152_v29 = vld [vmem:[#allocation9 + $0x184] sm:$0xf] }
 0x140   : > { %1308 = vmatpush.bf16.msra.mxu2 %v1898_v49  ;;  %1283 = vmatpush.bf16.msrb.mxu0 %v1762_v59  ;;  %v1946_v36 = vor.u32 %v2152_v29, %v1943_v30  ;;  %v2169_v59 = vld [vmem:[%s2822_s5 + $0x8] sm:$0xff] }
 0x142   : > { %1318 = vmatpush.bf16.msrb.mxu3 %v1986_v0  ;;  %v2179_v0 = vld [vmem:[%s2822_s5 + $0x58] sm:$0xff] }
 0x143   : > { %1296 = vmatpush.bf16.msra.mxu1 %v1826_v44  ;;  %v678_v44 = vperm.slane %v673_v8, 3  ;;  %v2176_v8 = vld [vmem:[%s2822_s5 + $0x40] sm:$0xff] }
 0x144   : > { %1309 = vmatpush.bf16.msra.mxu2 %v1890_v63  ;;  %1284 = vmatpush.bf16.msrb.mxu0 %v1754_v4  ;;  %v2177_v4 = vld [vmem:[%s2822_s5 + $0x48] sm:$0xff] }
 0x146   : > { %1319 = vmatpush.bf16.msrb.mxu3 %v1978_v10 }
 0x147   : > { %1297 = vmatpush.bf16.msra.mxu1 %v1818_v55  ;;  %v2171_v55 = vld [vmem:[%s2822_s5 + $0x18] sm:$0xff] }
 0x148   : > { %1310 = vmatpush.bf16.msra.mxu2 %v1882_v9  ;;  %v901_v9 = vperm.slane %v899_v6, 0 }
 0x14a   : > { %1320 = vmatpush.bf16.msrb.mxu3 %v1970_v14 }
 0x14e   : > { %1321 = vmatpush.bf16.msrb.mxu3 %v1962_v18 }
 0x152   : > { %1322 = vmatpush.bf16.msrb.mxu3 %v1954_v26 }
 0x156   : > { %1323 = vmatpush.bf16.msrb.mxu3 %v1946_v36  ;;  %v2187_v36 = vld [vmem:[#allocation10 + $0x18] sm:$0xff] }
 0x187   : > { %v789_v17 = vpop.f32.mrf.mxu1 }
 0x188   : > { %v790_v19 = vadd.f32 %v789_v17, %v676_v13 }
 0x18a   : > { %vm820_vm11 = vcmp.ge.f32.partialorder %v790_v19, 0.0  ;;  %v824_v24 = vmul.f32 0.2, %v790_v19 }
 0x18c   : > { %v776_v27 = vpop.f32.mrf.mxu3  ;;  %v828_v28 = vsel %vm820_vm11, %v790_v19, %v824_v24 }
 0x18d   : > { %v777_v31 = vadd.f32 %v776_v27, %v675_v23  ;;  %v832_v20 = vpack.c.bf16 %v828_v28, %v828_v28  ;;  %v902_v23 = vperm.slane %v899_v6, 1 }
 0x18e   : > { %v802_v32 = vpop.f32.mrf.mxu2 }
 0x18f   : > { %v803_v33 = vadd.f32 %v802_v32, %v677_v25  ;;  %v823_v34 = vmul.f32 0.2, %v777_v31  ;;  %1246 = vmatmul.bf16.vlgmr.msrb.gmra.mxu1 %v832_v20  ;;  %vm819_vm12 = vcmp.ge.f32.partialorder %v777_v31, 0.0  ;;  %v791_v35 = vpop.f32.mrf.mxu1 }
 0x190   : > { %1482 = vmatpush.bf16.msrb.mxu1 %v2183_v56 }
 0x191   : > { %vm821_vm13 = vcmp.ge.f32.partialorder %v803_v33, 0.0  ;;  %v825_v37 = vmul.f32 0.2, %v803_v33  ;;  %v827_v38 = vsel %vm819_vm12, %v777_v31, %v823_v34 }
 0x192   : > { %v831_v39 = vpack.c.bf16 %v827_v38, %v827_v38  ;;  %v2185_v38 = vld [vmem:[#allocation10 + $0x8] sm:$0xff] }
 0x193   : > { %v829_v40 = vsel %vm821_vm13, %v803_v33, %v825_v37  ;;  %v2186_v37 = vld [vmem:[#allocation10 + $0x10] sm:$0xff] }
 0x194   : > { %v833_v41 = vpack.c.bf16 %v829_v40, %v829_v40  ;;  %v778_v42 = vpop.f32.mrf.mxu3  ;;  %1233 = vmatmul.bf16.vlgmr.msra.gmra.mxu0 %v831_v39  ;;  %1483 = vmatpush.bf16.msrb.mxu1 %v2182_v58 }
 0x195   : > { %1469 = vmatpush.bf16.msra.mxu0 %v2175_v51  ;;  %v2322_v42 = vld [vmem:[%s2823_s6] ss:$0 sm:$0xff] }
 0x196   : > { %1259 = vmatmul.bf16.vlgmr.msrb.gmra.mxu2 %v833_v41  ;;  %v804_v43 = vpop.f32.mrf.mxu2 }
 0x197   : > { %1542 = vmatpush.bf16.msrb.mxu2 %v2187_v36 }
 0x198   : > { %1484 = vmatpush.bf16.msrb.mxu1 %v2181_v60 }
 0x199   : > { %1470 = vmatpush.bf16.msra.mxu0 %v2174_v52 }
 0x19b   : > { %1543 = vmatpush.bf16.msrb.mxu2 %v2186_v37 }
 0x19c   : > { %v815_v45 = vpop.f32.mrf.mxu3  ;;  %1485 = vmatpush.bf16.msrb.mxu1 %v2180_v62 }
 0x19d   : > { %v816_v46 = vadd.f32 %v815_v45, %v678_v44  ;;  %1471 = vmatpush.bf16.msra.mxu0 %v2173_v53 }
 0x19f   : > { %vm822_vm14 = vcmp.ge.f32.partialorder %v816_v46, 0.0  ;;  %v826_v47 = vmul.f32 0.2, %v816_v46  ;;  %1298 = vmatmul.bf16.vlgmr.msra.gmra.mxu1 %v832_v20  ;;  %1544 = vmatpush.bf16.msrb.mxu2 %v2185_v38 }
 0x1a0   : > { %1486 = vmatpush.bf16.msrb.mxu1 %v2179_v0 }
 0x1a1   : > { %v830_v48 = vsel %vm822_vm14, %v816_v46, %v826_v47  ;;  %1472 = vmatpush.bf16.msra.mxu0 %v2172_v54 }
 0x1a2   : > { %v834_v49 = vpack.c.bf16 %v830_v48, %v830_v48 }
 0x1a4   : > { %v817_v50 = vpop.f32.mrf.mxu3  ;;  %1272 = vmatmul.bf16.vlgmr.msra.gmra.mxu3 %v834_v49  ;;  %1285 = vmatmul.bf16.vlgmr.msrb.gmra.mxu0 %v831_v39  ;;  %v2184_v39 = vld [vmem:[#allocation10] sm:$0xff] }
 0x1a5   : > { %1473 = vmatpush.bf16.msra.mxu0 %v2171_v55  ;;  %1487 = vmatpush.bf16.msrb.mxu1 %v2178_v2  ;;  %v2323_v50 = vld [vmem:[%s2825_s8] ss:$0 sm:$0xff] }
 0x1a6   : > { %1311 = vmatmul.bf16.vlgmr.msra.gmra.mxu2 %v833_v41 }
 0x1a7   : > { %1545 = vmatpush.bf16.msrb.mxu2 %v2184_v39 }
 0x1a9   : > { %1474 = vmatpush.bf16.msra.mxu0 %v2170_v57  ;;  %1488 = vmatpush.bf16.msrb.mxu1 %v2177_v4 }
 0x1ad   : > { %1475 = vmatpush.bf16.msra.mxu0 %v2169_v59  ;;  %1489 = vmatpush.bf16.msrb.mxu1 %v2176_v8 }
 0x1b1   : > { %1476 = vmatpush.bf16.msra.mxu0 %v2168_v61 }
 0x1b4   : > { %1324 = vmatmul.bf16.vlgmr.msrb.gmra.mxu3 %v834_v49 }
 0x20c   : > { %v1247_v63 = vpop.f32.mrf.mxu1 }
 0x211   : > { %v1234_v1 = vpop.f32.mrf.mxu0 }
 0x212   : > { %v1235_v11 = vadd.f32 %v1234_v1, %v901_v9 }
 0x214   : > { %v1249_v3 = vpop.f32.mrf.mxu1  ;;  %v1248_v14 = vadd.f32 %v1247_v63, %v1235_v11 }
 0x219   : > { %v1260_v5 = vpop.f32.mrf.mxu2  ;;  %v1236_v7 = vpop.f32.mrf.mxu0 }
 0x21a   : > { %v1261_v16 = vadd.f32 %v1260_v5, %v1248_v14 }
 0x21c   : > { %v1299_v10 = vpop.f32.mrf.mxu1 }
 0x221   : > { %v1262_v12 = vpop.f32.mrf.mxu2  ;;  %v1286_v13 = vpop.f32.mrf.mxu0 }
 0x222   : > { %v1287_v27 = vadd.f32 %v1286_v13, %v902_v23 }
 0x224   : > { %v1301_v15 = vpop.f32.mrf.mxu1  ;;  %v1300_v29 = vadd.f32 %v1299_v10, %v1287_v27 }
 0x227   : > { %v1273_v17 = vpop.f32.mrf.mxu3 }
 0x228   : > { %v1274_v18 = vadd.f32 %v1273_v17, %v1261_v16 }
 0x229   : > { %v1312_v19 = vpop.f32.mrf.mxu2  ;;  %v1288_v21 = vpop.f32.mrf.mxu0 }
 0x22a   : > { %vm1329_vm15 = vcmp.ge.f32.partialorder %v1274_v18, 0.0  ;;  %v1331_v22 = vmul.f32 0.1, %v1274_v18  ;;  %v1313_v30 = vadd.f32 %v1312_v19, %v1300_v29 }
 0x22c   : > { %v1333_v24 = vsel %vm1329_vm15, %v1274_v18, %v1331_v22 }
 0x22d   : > { %v1335_v25 = vpack.c.bf16 %v1333_v24, %v1333_v24 }
 0x22f   : > { %v1275_v26 = vpop.f32.mrf.mxu3  ;;  %1477 = vmatmul.bf16.vlgmr.msra.gmra.mxu0 %v1335_v25 }
 0x231   : > { %v1314_v28 = vpop.f32.mrf.mxu2 }
 0x237   : > { %v1325_v31 = vpop.f32.mrf.mxu3 }
 0x238   : > { %v1326_v32 = vadd.f32 %v1325_v31, %v1313_v30 }
 0x23a   : > { %vm1330_vm0 = vcmp.ge.f32.partialorder %v1326_v32, 0.0  ;;  %v1332_v20 = vmul.f32 0.1, %v1326_v32 }
 0x23c   : > { %v1334_v33 = vsel %vm1330_vm0, %v1326_v32, %v1332_v20 }
 0x23d   : > { %v1336_v34 = vpack.c.bf16 %v1334_v33, %v1334_v33 }
 0x23f   : > { %v1327_v35 = vpop.f32.mrf.mxu3  ;;  %1490 = vmatmul.bf16.vlgmr.msrb.gmra.mxu1 %v1336_v34 }
 0x2ac   : > { %v1478_v40 = vpop.f32.mrf.mxu0 }
 0x2ad   : > { %v1479_v43 = vadd.f32 %v2322_v42, %v1478_v40 }
 0x2b4   : > { %v1480_v41 = vpop.f32.mrf.mxu0 }
 0x2bc   : > { %v1491_v44 = vpop.f32.mrf.mxu1 }
 0x2bd   : > { %v1492_v45 = vadd.f32 %v1491_v44, %v1479_v43 }
 0x2bf   : > { %vm1495_vm1 = vcmp.ge.f32.partialorder %v1492_v45, 0.0  ;;  %v1496_v46 = vmul.f32 0.1, %v1492_v45 }
 0x2c1   : > { %v1497_v47 = vsel %vm1495_vm1, %v1492_v45, %v1496_v46 }
 0x2c2   : > { %v1498_v48 = vpack.c.bf16 %v1497_v47, %v1497_v47 }
 0x2c4   : > { %v1493_v49 = vpop.f32.mrf.mxu1  ;;  %2083 = vmatmul.msk.bf16.vlgmr.msrb.gmra.mxu2 %vm763_vm10, %v1498_v48 }
 0x347   : > { %v1547_v51 = vpop.f32.mrf.mxu2 }
 0x348   : > { %v1548_v52 = vadd.f32 %v2323_v50, %v1547_v51 }
 0x34a   : > { %1551 = vst [vmem:[#allocation12] sm:$0x3] %v1548_v52 }
 0x34f   : > { %v1549_v53 = vpop.f32.mrf.mxu2 }
 0x350 PF: > { %s2842_s22 = sadd.s32 4294967295, %s2526_s13   ;;  %s2843_s3 = sld [smem:[#allocation22_spill]] }
 0x351   : > { %p2268_p0 = scmp.eq.s32.totalorder %s2842_s22, 2  ;;  %s2539_s17 = smov [#allocation12]  }
 0x352   : > { %s1560_s30 = sshll.u32 %s2539_s17, 4  ;;  %s1561_s30 = int_to_ptr.vmem [resolvable:$true] %s1560_s30 }
 0x356   : > { %s1562_s9 = sshll.u32 %s2843_s3, 4  ;;  %s1563_s9 = int_to_ptr.hbm [resolvable:$true] %s1562_s9 }
 0x357   : > { %2244 = dma.vmem_to_hbm [thread:$0]  (%p2268_p0), %s1561_s30, 32, %s1563_s9, [#allocation6]  }
 0x358   : > { %2505 = dma.done.wait (%p2268_p0), [#allocation6], 32  }
 0x359   : > { %2507 = vsyncadd (%p2268_p0), [#allocation6], 4294967264 }
 0x35a PF: > { %s23_s13 = sadd.s32 1, %s2526_s13   ;;  %s2844_s11 = sld [smem:[#allocation18_spill]] }
 0x35b   : > { %p20_p1 = scmp.ge.s32.totalorder %s23_s13, 5   ;;  %s2845_s19 = sld [smem:[#allocation17_spill]] }
 0x35c   : > { %s2846_s30 = smov %s2514_s10 }
 0x35d   :  { %22 = sbr.rel (!%p20_p1) target bundleno = 11 (0xb), region = 155 }
 0x360   : > { %s2847_s10 = smov %s2844_s11  ;;  %s2848_s11 = smov %s2522_s12 }
 0x361   : > { %s2849_s12 = smov %s2845_s19 }
 0x362   :  { %1576 = vsyncpa [#allocation5], 1 }
 0x363   :  { %1578 = vsyncpa [#allocation5 + $0x1], 1 }
 0x364   :  { %1579 = vsyncpa [#allocation8], 1 }
 0x365   :  { %1580 = vsyncpa [#allocation11], 1 }
 0x366   :  { %1581 = vsyncpa [#allocation6], 1 }
 0x367   :  { %1583 = vsyncpa [#allocation6 + $0x1], 1 }

</bundles_post_ra>
